<compile_context>
chip_gen: v7x
topology: tpu7x:2x2x1
jax: 0.10.0
libtpu: 0.0.40
codegen_flags: <defaults>
</compile_context>

<pallas_src>
import functools

import jax
import jax.numpy as jnp
from jax.experimental import pallas as pl
from jax.experimental.pallas import tpu as pltpu


HIDDEN = 21     # logical hidden width (matches the PyTorch module)
H_PAD = 128     # lane-aligned padded hidden width (requires HIDDEN   <= 128)
BIAS_ROWS = 8   # sublane-aligned region holding a single bias row
# NOTE: packing assumes HIDDEN <= 128 and n_actions <= 128 (fails loudly otherwise).


def _round_up(x, m):
    return (x + m - 1) // m * m


def dqn_kernel(obs_pad, x_ref, slab_ref, o_ref):
    """Fused 3-layer MLP on one (TB, n_obs) batch tile.

    slab_ref packs all weights/biases (one VMEM-resident array, 128 lanes):
      rows [0, n_obs)                       : W1  (n_obs x 21, lane-padded)
      row  obs_pad                          : b1
      rows [base2, base2+128)               : W2  (21 x 21, padded)
      row  base2 + 128                      : b2
      rows [base3, base3+128)               : W3  (21 x n_actions, padded)
      row  base3 + 128                      : b3
    Pad lanes/rows are zero, so padded hidden lanes stay exactly 0 through
    the ReLUs and never leak into the logical output columns.
    """
    n_obs = x_ref.shape[-1]
    n_actions = o_ref.shape[-1]
    base2 = obs_pad + BIAS_ROWS
    base3 = base2 + H_PAD + BIAS_ROWS

    x = x_ref[...]                                   # (TB, n_obs)

    # layer1 + ReLU
    h1 = jnp.dot(x, slab_ref[:n_obs, :], preferred_element_type=jnp.float32)
    h1 = jnp.maximum(h1 + slab_ref[obs_pad:obs_pad + 1, :], 0.0)

    # layer2 + ReLU
    h2 = jnp.dot(h1, slab_ref[base2:base2 + H_PAD, :],
                 preferred_element_type=jnp.float32)
    h2 = jnp.maximum(h2 + slab_ref[base2 + H_PAD:base2 + H_PAD + 1, :], 0.0)

    # layer3 (no activation); write back only the logical action columns so
    # HBM writeback is (TB, n_actions) instead of a 128-wide slab.
    out = (jnp.dot(h2, slab_ref[base3:base3 + H_PAD, :],
                   preferred_element_type=jnp.float32)
           + slab_ref[base3 + H_PAD:base3 + H_PAD + 1, :])
    o_ref[...] = out[:, :n_actions]


def init_dqn_params(key, n_observations, n_actions, hidden=HIDDEN):
    """Deterministic init mimicking nn.Linear's uniform(-1/sqrt(fan_in), ...)."""
    def linear(key, fan_in, fan_out):
        kw, kb = jax.random.split(key)
        bound = 1.0 / jnp.sqrt(jnp.float32(fan_in))
        # stored as (in, out) so the kernel computes x @ W
        w = jax.random.uniform(kw, (fan_in, fan_out), jnp.float32, -bound, bound)
        b = jax.random.uniform(kb, (1, fan_out), jnp.float32, -bound, bound)
        return w, b

    k1, k2, k3 = jax.random.split(key, 3)
    w1, b1 = linear(k1, n_observations, hidden)
    w2, b2 = linear(k2, hidden, hidden)
    w3, b3 = linear(k3, hidden, n_actions)
    return (w1, b1, w2, b2, w3, b3)


def pack_dqn_params(params, n_observations):
    """Pack all (w, b) pairs into ONE padded, lane-aligned slab (done once)."""
    w1, b1, w2, b2, w3, b3 = params
    assert w1.shape[1] <= H_PAD and w3.shape[1] <= H_PAD

    obs_pad = _round_up(n_observations, 8)
    base2 = obs_pad + BIAS_ROWS
    base3 = base2 + H_PAD + BIAS_ROWS
    rows = base3 + H_PAD + BIAS_ROWS

    s = jnp.zeros((rows, H_PAD), jnp.float32)
    s = s.at[:w1.shape[0], :w1.shape[1]].set(w1)
    s = s.at[obs_pad, :b1.shape[-1]].set(b1.reshape(-1))
    s = s.at[base2:base2 + w2.shape[0], :w2.shape[1]].set(w2)
    s = s.at[base2 + H_PAD, :b2.shape[-1]].set(b2.reshape(-1))
    s = s.at[base3:base3 + w3.shape[0], :w3.shape[1]].set(w3)
    s = s.at[base3 + H_PAD, :b3.shape[-1]].set(b3.reshape(-1))
    return obs_pad, s


@functools.partial(jax.jit, static_argnames=("n_actions", "obs_pad"))
def dqn_forward(x, slab, *, n_actions, obs_pad):
    """x: (B, n_observations) float32 -> (B, n_actions) float32."""
    B, n_obs = x.shape

    # Batch tile: large (up to 2048 rows) to amortize the ~0.35 us per-grid-step
    # overhead, but capped so the grid keeps >=2 steps when possible so v7x's
    # second TensorCore gets work via the "parallel" batch axis.
    if B <= 8:
        TB = 8
    else:
        TB = min(2048, _round_up(pl.cdiv(B, 2), 8))
    B_pad = _round_up(B, TB)

    # Only the batch dim is padded (and only when needed); feature dim stays
    # at its logical width (block last dim == full array dim, which is legal).
    x_p = x if B_pad == B else jnp.pad(x, ((0, B_pad - B), (0, 0)))

    out = pl.pallas_call(
        functools.partial(dqn_kernel, obs_pad),
        out_shape=jax.ShapeDtypeStruct((B_pad, n_actions), jnp.float32),
        grid=(B_pad // TB,),
        in_specs=[
            pl.BlockSpec((TB, n_obs), lambda i: (i, 0)),   # x: tiled over batch
            pl.BlockSpec(slab.shape, lambda i: (0, 0)),    # packed weights: resident
        ],
        out_specs=pl.BlockSpec((TB, n_actions), lambda i: (i, 0)),
        compiler_params=pltpu.CompilerParams(
            dimension_semantics=("parallel",),
        ),
    )(x_p, slab)

    return out if B_pad == B else out[:B]


def dqn_reference(x, params):
    """Pure-JAX reference for correctness checking."""
    w1, b1, w2, b2, w3, b3 = params
    h1 = jnp.maximum(x @ w1 + b1, 0.0)
    h2 = jnp.maximum(h1 @ w2 + b2, 0.0)
    return h2 @ w3 + b3


if __name__ == "__main__":
    n_observations = 8
    n_actions = 4

    key = jax.random.PRNGKey(0)
    kx, kp, kx2 = jax.random.split(key, 3)

    params = init_dqn_params(kp, n_observations, n_actions)
    obs_pad, slab = pack_dqn_params(params, n_observations)

    # Small "acting" batch.
    batch = 8
    x = jax.random.normal(kx, (batch, n_observations), dtype=jnp.float32)
    out = dqn_forward(x, slab, n_actions=n_actions, obs_pad=obs_pad)
    out = jax.block_until_ready(out)
    ref = dqn_reference(x, params)
    assert out.shape == (batch, n_actions), out.shape
    assert jnp.allclose(out, ref, atol=1e-5, rtol=1e-5), (
        f"max abs diff {jnp.max(jnp.abs(out - ref))}"
    )

    # Larger batch exercising batch padding + a multi-step (>=2) grid.
    batch2 = 100
    x2 = jax.random.normal(kx2, (batch2, n_observations), dtype=jnp.float32)
    out2 = dqn_forward(x2, slab, n_actions=n_actions, obs_pad=obs_pad)
    out2 = jax.block_until_ready(out2)
    ref2 = dqn_reference(x2, params)
    assert out2.shape == (batch2, n_actions), out2.shape
    assert jnp.allclose(out2, ref2, atol=1e-5, rtol=1e-5), (
        f"max abs diff {jnp.max(jnp.abs(out2 - ref2))}"
    )

    print("KERNEL_OK")
</pallas_src>

<mosaic_0001>
module attributes {stable_mosaic.version = 11 : i64} {
  func.func @dqn_kernel(%arg0: i32, %arg1: memref<8x8xf32, #tpu.memory_space<vmem>>, %arg2: memref<288x128xf32, #tpu.memory_space<vmem>>, %arg3: memref<8x4xf32, #tpu.memory_space<vmem>>) attributes {dimension_semantics = [#tpu.dimension_semantics<parallel>], iteration_bounds = array<i64: 1>, scalar_prefetch = 0 : i64, scratch_operands = 0 : i64, tpu.core_type = #tpu.core_type<tc>, window_params = [{transform_indices = @transform_0, window_bounds = array<i64: 8, 8>}, {pipeline_mode = #tpu.pipeline_mode<synchronous>, transform_indices = @transform_1, window_bounds = array<i64: 288, 128>}, {transform_indices = @transform_2, window_bounds = array<i64: 8, 4>}]} {
    %c0 = arith.constant 0 : index
    %c0_0 = arith.constant 0 : index
    %0 = vector.load %arg1[%c0, %c0_0] : memref<8x8xf32, #tpu.memory_space<vmem>>, vector<8x8xf32>
    %c0_1 = arith.constant 0 : index
    %c0_2 = arith.constant 0 : index
    %1 = vector.load %arg2[%c0_1, %c0_2] : memref<288x128xf32, #tpu.memory_space<vmem>>, vector<8x128xf32>
    %cst = arith.constant dense<0.000000e+00> : vector<8x128xf32>
    %2 = tpu.matmul %0, %1, %cst {dimension_numbers = #tpu.dot_dimension_numbers<[1], [0], [0], [1], [0, 0, 1, 1], [], []>} : vector<8x8xf32>, vector<8x128xf32>, vector<8x128xf32> -> vector<8x128xf32>
    %c8 = arith.constant 8 : index
    %c0_3 = arith.constant 0 : index
    %3 = vector.load %arg2[%c8, %c0_3] : memref<288x128xf32, #tpu.memory_space<vmem>>, vector<1x128xf32>
    %4 = vector.broadcast %3 : vector<1x128xf32> to vector<8x128xf32>
    %5 = arith.addf %2, %4 : vector<8x128xf32>
    %cst_4 = arith.constant 0.000000e+00 : f32
    %6 = vector.broadcast %cst_4 : f32 to vector<8x128xf32>
    %7 = arith.maximumf %5, %6 : vector<8x128xf32>
    %c16 = arith.constant 16 : index
    %c0_5 = arith.constant 0 : index
    %8 = vector.load %arg2[%c16, %c0_5] : memref<288x128xf32, #tpu.memory_space<vmem>>, vector<128x128xf32>
    %cst_6 = arith.constant dense<0.000000e+00> : vector<8x128xf32>
    %9 = tpu.matmul %7, %8, %cst_6 {dimension_numbers = #tpu.dot_dimension_numbers<[1], [0], [0], [1], [0, 0, 1, 1], [], []>} : vector<8x128xf32>, vector<128x128xf32>, vector<8x128xf32> -> vector<8x128xf32>
    %c144 = arith.constant 144 : index
    %c0_7 = arith.constant 0 : index
    %10 = vector.load %arg2[%c144, %c0_7] : memref<288x128xf32, #tpu.memory_space<vmem>>, vector<1x128xf32>
    %11 = vector.broadcast %10 : vector<1x128xf32> to vector<8x128xf32>
    %12 = arith.addf %9, %11 : vector<8x128xf32>
    %cst_8 = arith.constant 0.000000e+00 : f32
    %13 = vector.broadcast %cst_8 : f32 to vector<8x128xf32>
    %14 = arith.maximumf %12, %13 : vector<8x128xf32>
    %c152 = arith.constant 152 : index
    %c0_9 = arith.constant 0 : index
    %15 = vector.load %arg2[%c152, %c0_9] : memref<288x128xf32, #tpu.memory_space<vmem>>, vector<128x128xf32>
    %cst_10 = arith.constant dense<0.000000e+00> : vector<8x128xf32>
    %16 = tpu.matmul %14, %15, %cst_10 {dimension_numbers = #tpu.dot_dimension_numbers<[1], [0], [0], [1], [0, 0, 1, 1], [], []>} : vector<8x128xf32>, vector<128x128xf32>, vector<8x128xf32> -> vector<8x128xf32>
    %c280 = arith.constant 280 : index
    %c0_11 = arith.constant 0 : index
    %17 = vector.load %arg2[%c280, %c0_11] : memref<288x128xf32, #tpu.memory_space<vmem>>, vector<1x128xf32>
    %18 = vector.broadcast %17 : vector<1x128xf32> to vector<8x128xf32>
    %19 = arith.addf %16, %18 : vector<8x128xf32>
    %20 = vector.extract_strided_slice %19 {offsets = [0, 0], sizes = [8, 4], strides = [1, 1]} : vector<8x128xf32> to vector<8x4xf32>
    %c0_12 = arith.constant 0 : index
    %c0_13 = arith.constant 0 : index
    %21 = vector.load %arg3[%c0_12, %c0_13] : memref<8x4xf32, #tpu.memory_space<vmem>>, vector<8x4xf32>
    tpu.vector_store %arg3[%c0_12, %c0_13], %20 {strides = array<i32>} : memref<8x4xf32, #tpu.memory_space<vmem>>, vector<8x4xf32>,
    return
  }
  func.func @transform_0(%arg0: i32) -> (i32, i32) {
    %c0_i32 = arith.constant 0 : i32
    %c0_i32_0 = arith.constant 0 : i32
    return %arg0, %c0_i32 : i32, i32
  }
  func.func @transform_1(%arg0: i32) -> (i32, i32) {
    %c0_i32 = arith.constant 0 : i32
    %c0_i32_0 = arith.constant 0 : i32
    %c0_i32_1 = arith.constant 0 : i32
    return %c0_i32, %c0_i32_0 : i32, i32
  }
  func.func @transform_2(%arg0: i32) -> (i32, i32) {
    %c0_i32 = arith.constant 0 : i32
    %c0_i32_0 = arith.constant 0 : i32
    return %arg0, %c0_i32 : i32, i32
  }
}

</mosaic_0001>

<bundles_post_ra>
// kernel: dqn_forward.1
= control target key start
LH: loop header
LB: loop body
LE: loop exit
PB: predicated region body
PF: predicated region fallthrough
CT: control target
= control target key end

     0   :  { %7 = vsyncpa [#allocation3], 0  ;;  %s603_s0 = inlined_call_operand.hbm [shape: f32[8,8], index: 0, kind: input, shape index: {}]   ;;  %s604_s1 = inlined_call_operand.hbm [shape: f32[288,128], index: 1, kind: input, shape index: {}]   ;;  %s605_s2 = inlined_call_operand.vmem [shape: f32[8,4], index: 2, kind: output, shape index: {}]  }
   0x1   :  { %8 = vsyncpa [#allocation5], 0  ;;  %s528_s9 = smov [#allocation2]   ;;  %s529_s11 = smov [#allocation4]  }
   0x2   :  { %s15_s10 = sshll.u32 %s528_s9, 4  ;;  %s24_s12 = sshll.u32 %s529_s11, 4  ;;  %s16_s10 = int_to_ptr.vmem [resolvable:$true] %s15_s10  ;;  %s550_s12 = int_to_ptr.vmem [resolvable:$true] %s24_s12 }
   0x3   :  { %s480_s15 = scalar_lea.hbm %s603_s0, 128 }
   0x4   :  { %p481_p0 = scmp.ne.s32.totalorder %s603_s0, %s480_s15  ;;  %p484_p1 = scmp.lt.u32.totalorder %s480_s15, %s603_s0 }
   0x6   :  { %p486_p2 = pnand %p484_p1, %p481_p0 }
   0x8   :  { %489 = shalt.err (!%p486_p2)
}
   0x9   :  { %s490_s20 = scalar_lea.vmem %s16_s10, 128  ;;  %p495_p4 = scmp.lt.s32.totalorder %s16_s10, %s16_s10 }
   0xa   :  { %p491_p3 = scmp.ne.s32.totalorder %s16_s10, %s490_s20  ;;  %p496_p5 = scmp.lt.s32.totalorder %s490_s20, %s490_s20 }
   0xc   :  { %p497_p6 = por %p496_p5, %p495_p4 }
   0xe   :  { %p498_p7 = pnand %p497_p6, %p491_p3 }
  0x10   :  { %501 = shalt.err (!%p498_p7)
}
  0x11   :  { %18 = dma.hbm_to_vmem [thread:$0]  %s603_s0, 128, %s16_s10, [#allocation3]  }
  0x12   :  { %s502_s25 = scalar_lea.hbm %s604_s1, 4608 }
  0x13   :  { %p503_p8 = scmp.ne.s32.totalorder %s604_s1, %s502_s25  ;;  %p506_p9 = scmp.lt.u32.totalorder %s502_s25, %s604_s1 }
  0x15   :  { %p508_p10 = pnand %p506_p9, %p503_p8 }
  0x17   :  { %511 = shalt.err (!%p508_p10)
}
  0x18   :  { %s512_s30 = scalar_lea.vmem %s550_s12, 4608  ;;  %p517_p12 = scmp.lt.s32.totalorder %s550_s12, %s550_s12 }
  0x19   :  { %p513_p11 = scmp.ne.s32.totalorder %s550_s12, %s512_s30  ;;  %p518_p13 = scmp.lt.s32.totalorder %s512_s30, %s512_s30 }
  0x1b   :  { %p519_p0 = por %p518_p13, %p517_p12 }
  0x1d   :  { %p520_p1 = pnand %p519_p0, %p513_p11 }
  0x1f   :  { %523 = shalt.err (!%p520_p1)
}
  0x20   :  { %s530_s0 = smov 128   ;;  %s531_s3 = smov 8  }
  0x21   :  { %30 = dma.hbm_to_vmem [thread:$0]  %s604_s1, 4608, %s550_s12, [#allocation5], %s530_s0, %s530_s0, %s531_s3  }
  0x22   :  { %524 = dma.done.wait [#allocation3], 128  }
  0x23   :  { %525 = vsyncadd [#allocation3], 4294967168 }
  0x24   :  { %526 = dma.done.wait [#allocation5], 4608  }
  0x25   :  { %527 = vsyncadd [#allocation5], 4294962688  ;;  %v532_v0 = vmov 0.0   ;;  %vm533_vm0 = vmmov 0   ;;  %v534_v1 = vmov 0.0|0.0   ;;  %vm44_vm1 = vcmask 64512  }
  0x26   :  { %350 = vmatprep.subr.mxu0 %v532_v0  ;;  %352 = vmatprep.mubr.msk.f32.mxu0 %vm533_vm0, %v532_v0  ;;  %v38_v2 = vld [vmem:[#allocation4] sm:$0xff]  ;;  %v37_v3 = vld [vmem:[#allocation2] sm:$0xff]  ;;  %v119_v4 = vld [vmem:[#allocation4 + $0x10] sm:$0xff]  ;;  %vm302_vm2 = vcmask 31744  }
  0x27   :  { %425 = vmatprep.subr.bf16.mxu1 %v534_v1  ;;  %387 = vmatprep.mubr.msk.f32.mxu1 %vm533_vm0, %v532_v0  ;;  %v120_v5 = vld [vmem:[#allocation4 + $0x18] sm:$0xff]  ;;  %v121_v6 = vld [vmem:[#allocation4 + $0x20] sm:$0xff]  ;;  %v122_v7 = vld [vmem:[#allocation4 + $0x28] sm:$0xff] }
  0x28   :  { %351 = vmatpush3.msra.mxu0 %v38_v2  ;;  %v426_v8 = vpack.c.bf16 %v120_v5, %v119_v4  ;;  %v429_v9 = vpack.c.bf16 %v122_v7, %v121_v6  ;;  %v123_v10 = vld [vmem:[#allocation4 + $0x30] sm:$0xff]  ;;  %v124_v11 = vld [vmem:[#allocation4 + $0x38] sm:$0xff]  ;;  %v125_v13 = vld [vmem:[#allocation4 + $0x40] sm:$0xff] }
  0x29   :  { %353 = vmatmul.mubr.msk.f32.vlgmr.msra.gmra.mrb[0].mxu0 %vm44_vm1, %v37_v3  ;;  %449 = vmatprep.subr.bf16.mxu0 %v534_v1  ;;  %v432_v12 = vpack.c.bf16 %v124_v11, %v123_v10  ;;  %v126_v14 = vld [vmem:[#allocation4 + $0x48] sm:$0xff]  ;;  %v127_v16 = vld [vmem:[#allocation4 + $0x50] sm:$0xff]  ;;  %v128_v17 = vld [vmem:[#allocation4 + $0x58] sm:$0xff] }
  0x2a   :  { %422 = vmatprep.mubr.msk.f32.mxu0 %vm533_vm0, %v532_v0  ;;  %427 = vmatpush3.bf16.msra.mxu1 %v426_v8  ;;  %v435_v15 = vpack.c.bf16 %v126_v14, %v125_v13  ;;  %v438_v18 = vpack.c.bf16 %v128_v17, %v127_v16  ;;  %v129_v19 = vld [vmem:[#allocation4 + $0x60] sm:$0xff]  ;;  %v130_v20 = vld [vmem:[#allocation4 + $0x68] sm:$0xff]  ;;  %v131_v22 = vld [vmem:[#allocation4 + $0x70] sm:$0xff] }
  0x2b   :  { %428 = vmatprep.subr.bf16.mxu1 %v534_v1  ;;  %v441_v21 = vpack.c.bf16 %v130_v20, %v129_v19  ;;  %v132_v23 = vld [vmem:[#allocation4 + $0x78] sm:$0xff]  ;;  %v133_v25 = vld [vmem:[#allocation4 + $0x80] sm:$0xff]  ;;  %v134_v26 = vld [vmem:[#allocation4 + $0x88] sm:$0xff] }
  0x2c   :  { %v444_v24 = vpack.c.bf16 %v132_v23, %v131_v22  ;;  %v447_v27 = vpack.c.bf16 %v134_v26, %v133_v25  ;;  %v211_v28 = vld [vmem:[#allocation4 + $0x98] sm:$0xff]  ;;  %v212_v29 = vld [vmem:[#allocation4 + $0xa0] sm:$0xff]  ;;  %v213_v30 = vld [vmem:[#allocation4 + $0xa8] sm:$0xff] }
  0x2d   :  { %v450_v31 = vpack.c.bf16 %v212_v29, %v211_v28  ;;  %v214_v32 = vld [vmem:[#allocation4 + $0xb0] sm:$0xff]  ;;  %v215_v34 = vld [vmem:[#allocation4 + $0xb8] sm:$0xff]  ;;  %v216_v35 = vld [vmem:[#allocation4 + $0xc0] sm:$0xff] }
  0x2e   :  { %430 = vmatpush3.bf16.msra.mxu1 %v429_v9  ;;  %v453_v33 = vpack.c.bf16 %v214_v32, %v213_v30  ;;  %v456_v36 = vpack.c.bf16 %v216_v35, %v215_v34  ;;  %v217_v37 = vld [vmem:[#allocation4 + $0xc8] sm:$0xff]  ;;  %v218_v38 = vld [vmem:[#allocation4 + $0xd0] sm:$0xff]  ;;  %v219_v40 = vld [vmem:[#allocation4 + $0xd8] sm:$0xff] }
  0x2f   :  { %431 = vmatprep.subr.bf16.mxu1 %v534_v1  ;;  %451 = vmatpush3.bf16.msra.mxu0 %v450_v31  ;;  %v459_v39 = vpack.c.bf16 %v218_v38, %v217_v37  ;;  %v220_v41 = vld [vmem:[#allocation4 + $0xe0] sm:$0xff]  ;;  %v221_v43 = vld [vmem:[#allocation4 + $0xe8] sm:$0xff]  ;;  %v222_v44 = vld [vmem:[#allocation4 + $0xf0] sm:$0xff] }
  0x30   :  { %452 = vmatprep.subr.bf16.mxu0 %v534_v1  ;;  %v462_v42 = vpack.c.bf16 %v220_v41, %v219_v40  ;;  %v465_v45 = vpack.c.bf16 %v222_v44, %v221_v43  ;;  %v223_v46 = vld [vmem:[#allocation4 + $0xf8] sm:$0xff]  ;;  %v224_v47 = vld [vmem:[#allocation4 + $0x100] sm:$0xff]  ;;  %v310_v49 = vld [vmem:[#allocation4 + $0x8] ss:$0 sm:$0xff] }
  0x31   :  { %v468_v48 = vpack.c.bf16 %v224_v47, %v223_v46  ;;  %v225_v54 = vld [vmem:[#allocation4 + $0x108] sm:$0xff]  ;;  %v226_v55 = vld [vmem:[#allocation4 + $0x110] sm:$0xff]  ;;  %v313_v62 = vld [vmem:[#allocation4 + $0x118] ss:$0 sm:$0xff] }
  0x32   :  { %433 = vmatpush3.bf16.msra.mxu1 %v432_v12  ;;  %v471_v56 = vpack.c.bf16 %v226_v55, %v225_v54  ;;  %v312_v57 = vld [vmem:[#allocation4 + $0x90] ss:$0 sm:$0xff] }
  0x33   :  { %434 = vmatprep.subr.bf16.mxu1 %v534_v1  ;;  %454 = vmatpush3.bf16.msra.mxu0 %v453_v33 }
  0x34   :  { %455 = vmatprep.subr.bf16.mxu0 %v534_v1 }
  0x36   :  { %436 = vmatpush3.bf16.msra.mxu1 %v435_v15 }
  0x37   :  { %437 = vmatprep.subr.bf16.mxu1 %v534_v1  ;;  %457 = vmatpush3.bf16.msra.mxu0 %v456_v36 }
  0x38   :  { %458 = vmatprep.subr.bf16.mxu0 %v534_v1 }
  0x3a   :  { %439 = vmatpush3.bf16.msra.mxu1 %v438_v18 }
  0x3b   :  { %440 = vmatprep.subr.bf16.mxu1 %v534_v1  ;;  %460 = vmatpush3.bf16.msra.mxu0 %v459_v39 }
  0x3c   :  { %461 = vmatprep.subr.bf16.mxu0 %v534_v1 }
  0x3e   :  { %442 = vmatpush3.bf16.msra.mxu1 %v441_v21 }
  0x3f   :  { %443 = vmatprep.subr.bf16.mxu1 %v534_v1  ;;  %463 = vmatpush3.bf16.msra.mxu0 %v462_v42 }
  0x40   :  { %464 = vmatprep.subr.bf16.mxu0 %v534_v1 }
  0x42   :  { %445 = vmatpush3.bf16.msra.mxu1 %v444_v24 }
  0x43   :  { %446 = vmatprep.subr.bf16.mxu1 %v534_v1  ;;  %466 = vmatpush3.bf16.msra.mxu0 %v465_v45 }
  0x44   :  { %467 = vmatprep.subr.bf16.mxu0 %v534_v1 }
  0x46   :  { %448 = vmatpush3.bf16.msra.mxu1 %v447_v27 }
  0x47   :  { %469 = vmatpush3.bf16.msra.mxu0 %v468_v48 }
  0x48   :  { %470 = vmatprep.subr.bf16.mxu0 %v534_v1 }
  0x4b   :  { %472 = vmatpush3.bf16.msra.mxu0 %v471_v56 }
  0xfc   :  { %v114_v50 = vpop.f32.mrb[0].mxu0 }
  0xfd   :  { %v115_v51 = vadd.f32 %v310_v49, %v114_v50  ;;  %v354_v52 = vpop.f32.mrb[1].mxu0 }
  0xff   :  { %v118_v53 = vmax.f32 %v115_v51, 0.0 }
 0x101   :  { %388 = vmatmul.mubr.f32.vlgmr.msra.gmra.mrb[0].mxu1 %v118_v53 }
 0x1d4   :  { %v206_v58 = vpop.f32.mrb[0].mxu1 }
 0x1d5   :  { %v207_v59 = vadd.f32 %v312_v57, %v206_v58  ;;  %v389_v60 = vpop.f32.mrb[1].mxu1 }
 0x1d7   :  { %v210_v61 = vmax.f32 %v207_v59, 0.0 }
 0x1d9   :  { %423 = vmatmul.mubr.f32.vlgmr.msra.gmra.mrb[2].mxu0 %v210_v61 }
 0x2ac   :  { %v298_v63 = vpop.f32.mrb[2].mxu0 }
 0x2ad   :  { %v299_v0 = vadd.f32 %v313_v62, %v298_v63  ;;  %v424_v1 = vpop.f32.mrb[3].mxu0 }
 0x2af   :  { %303 = vst.msk [vmem:[%s605_s2] sm:$0xff] %vm302_vm2, %v299_v0 }
 0x2b0   :  { %308 = vsyncpa [#allocation3], 1 }
 0x2b1   :  { %309 = vsyncpa [#allocation5], 1 }

</bundles_post_ra>
